<compile_context>
chip_gen: v5e
topology: v5e:2x2
jax: 0.10.0
libtpu: 0.0.40
codegen_flags: <defaults>
</compile_context>

<pallas_src>
import functools

import jax
import jax.numpy as jnp
from jax.experimental import pallas as pl
from jax.experimental.pallas import tpu as pltpu

P_SQ = 1.0  # 1 ** 2, folded into the kernel math below.
_LANE_MIN = 128


def _tpu_config():
    """Pick (tile_bytes, vmem_limit_bytes) per TPU generation, defensively."""
    try:
        vmem = int(pltpu.get_tpu_info().vmem_capacity_bytes)
    except Exception:
        vmem = 64 << 20  # conservative fallback: assume v7x-style 64 MiB / TC
    if vmem <= (64 << 20):
        # v7x: 2 arrays x 2 buffers x 6 MiB = 24 MiB, limit 40 MiB (< 64 MiB phys).
        return 6 << 20, 40 << 20
    # v5e / v6e (128 MiB phys): 8 MiB tiles -> 32 MiB buffers, limit 48 MiB.
    return 8 << 20, 48 << 20


_TILE_BYTES, _VMEM_LIMIT_BYTES = _tpu_config()


def _reqlu_kernel(x_ref, o_ref):
    # NOTE: the final grid block may be ragged; Pallas then reads garbage rows
    # and masks the write. Safe only because this is purely elementwise --
    # do NOT add block-level reductions here.
    x = x_ref[...].astype(jnp.float32)        # upcast (no-op for f32 inputs)
    r = jnp.maximum(x, 0.0)                   # relu            (VPU)
    r2 = r * r                                #                 (VPU)
    # p_sq == 1: p_sq*(sqrt(1 + r^2/p_sq) - 1) == r^2 / (sqrt(1 + r^2) + 1)
    y = r2 / (jnp.sqrt(1.0 + r2) + 1.0)       # sqrt on EUP, free under HBM traffic
    o_ref[...] = y.astype(o_ref.dtype)


@functools.partial(jax.jit, donate_argnums=0)
def reqlu(x: jax.Array) -> jax.Array:
    """Applies ReQLU elementwise. Accepts any shape (e.g. NCHW). Donates x."""
    orig_shape = x.shape
    dtype = x.dtype
    total = x.size
    if total == 0:
        return x

    x_flat = jnp.ravel(x)
    pad = (-total) % _LANE_MIN
    if pad:
        # TODO(synk): guarantee 128-aligned sizes upstream so this copy is dead.
        x_flat = jnp.pad(x_flat, (0, pad))
    padded = total + pad

    # Widest lane-dense last dim that divides the (padded) flat size.
    lane = _LANE_MIN
    for cand in (2048, 1024, 512, 256):
        if padded % cand == 0:
            lane = cand
            break
    rows = padded // lane

    # Block row count: ~_TILE_BYTES per block, multiple of 32 (dtype-safe
    # sublane alignment for f32/bf16/int8) unless the block covers all rows.
    itemsize = jnp.dtype(dtype).itemsize
    bytes_rows = max(32, (_TILE_BYTES // (lane * itemsize)) // 32 * 32)
    block_rows = min(rows, bytes_rows)
    if rows >= 64:
        # Keep grid >= 2 so the "parallel" axis can split across v7x's 2 TCs.
        block_rows = min(block_rows, (rows // 2) // 32 * 32)
    grid = pl.cdiv(rows, block_rows)

    x2d = x_flat.reshape(rows, lane)

    n = rows * lane
    cost = pl.CostEstimate(
        flops=5 * n, transcendentals=n, bytes_accessed=2 * n * itemsize)

    out2d = pl.pallas_call(
        _reqlu_kernel,
        out_shape=jax.ShapeDtypeStruct((rows, lane), dtype),
        grid_spec=pltpu.PrefetchScalarGridSpec(
            num_scalar_prefetch=0,
            grid=(grid,),
            in_specs=[pl.BlockSpec((block_rows, lane), lambda i: (i, 0))],
            out_specs=pl.BlockSpec((block_rows, lane), lambda i: (i, 0)),
        ),
        compiler_params=pltpu.CompilerParams(
            dimension_semantics=("parallel",),
            vmem_limit_bytes=_VMEM_LIMIT_BYTES,
        ),
        cost_estimate=cost,
        input_output_aliases={0: 0},  # elementwise, same shape/dtype -> in place
    )(x2d)

    out_flat = out2d.reshape(-1)
    if pad:
        out_flat = out_flat[:total]
    return out_flat.reshape(orig_shape)


def reqlu_ref(x: jax.Array) -> jax.Array:
    """Literal translation of the PyTorch forward."""
    r = jnp.maximum(x, 0.0)
    return P_SQ * (jnp.sqrt(1.0 + r * r / P_SQ) - 1.0)


if __name__ == "__main__":
    key = jax.random.PRNGKey(0)
    # NCHW input, consistent with PyTorch conv-style tensors.
    x = jax.random.normal(key, (2, 4, 16, 16), dtype=jnp.float32)

    shape, dtype = x.shape, x.dtype
    # Compute the reference BEFORE calling reqlu: x is donated to the kernel.
    ref = jax.block_until_ready(reqlu_ref(x))

    out = jax.block_until_ready(reqlu(x))

    assert out.shape == shape
    assert out.dtype == dtype
    assert jnp.allclose(out, ref, atol=1e-6, rtol=1e-5), "mismatch vs reference"

    print("KERNEL_OK")
</pallas_src>

<mosaic_0001>
module attributes {stable_mosaic.version = 11 : i64} {
  func.func @_reqlu_kernel(%arg0: i32, %arg1: memref<1x2048xf32, #tpu.memory_space<vmem>>, %arg2: memref<1x2048xf32, #tpu.memory_space<vmem>>) attributes {dimension_semantics = [#tpu.dimension_semantics<parallel>], iteration_bounds = array<i64: 1>, scalar_prefetch = 0 : i64, scratch_operands = 0 : i64, tpu.core_type = #tpu.core_type<tc>, window_params = [{transform_indices = @transform_0, window_bounds = array<i64: 1, 2048>}, {transform_indices = @transform_1, window_bounds = array<i64: 1, 2048>}]} {
    %c0 = arith.constant 0 : index
    %c0_0 = arith.constant 0 : index
    %0 = vector.load %arg1[%c0, %c0_0] : memref<1x2048xf32, #tpu.memory_space<vmem>>, vector<1x2048xf32>
    %cst = arith.constant 0.000000e+00 : f32
    %1 = vector.broadcast %cst : f32 to vector<1x2048xf32>
    %2 = arith.maximumf %0, %1 : vector<1x2048xf32>
    %3 = arith.mulf %2, %2 : vector<1x2048xf32>
    %cst_1 = arith.constant 1.000000e+00 : f32
    %4 = vector.broadcast %cst_1 : f32 to vector<1x2048xf32>
    %5 = arith.addf %4, %3 : vector<1x2048xf32>
    %6 = math.sqrt %5 : vector<1x2048xf32>
    %cst_2 = arith.constant 1.000000e+00 : f32
    %7 = vector.broadcast %cst_2 : f32 to vector<1x2048xf32>
    %8 = arith.addf %6, %7 : vector<1x2048xf32>
    %9 = arith.divf %3, %8 : vector<1x2048xf32>
    %c0_3 = arith.constant 0 : index
    %c0_4 = arith.constant 0 : index
    %10 = vector.load %arg2[%c0_3, %c0_4] : memref<1x2048xf32, #tpu.memory_space<vmem>>, vector<1x2048xf32>
    tpu.vector_store %arg2[%c0_3, %c0_4], %9 {strides = array<i32>} : memref<1x2048xf32, #tpu.memory_space<vmem>>, vector<1x2048xf32>,
    return
  }
  func.func @transform_0(%arg0: i32) -> (i32, i32) {
    %c0_i32 = arith.constant 0 : i32
    %c0_i32_0 = arith.constant 0 : i32
    return %arg0, %c0_i32 : i32, i32
  }
  func.func @transform_1(%arg0: i32) -> (i32, i32) {
    %c0_i32 = arith.constant 0 : i32
    %c0_i32_0 = arith.constant 0 : i32
    return %arg0, %c0_i32 : i32, i32
  }
}

</mosaic_0001>

<bundles_post_ra>
// kernel: reqlu.1
= control target key start
LH: loop header
LB: loop body
LE: loop exit
PB: predicated region body
PF: predicated region fallthrough
CT: control target
= control target key end

     0   :  { %s116_s0 = inlined_call_operand.vmem [shape: f32[1,2048], index: 0, kind: input, shape index: {}, may-alias: {0,1}]   ;;  %s117_s1 = inlined_call_operand.vmem [shape: f32[1,2048], index: 1, kind: output, shape index: {}, may-alias: {0,1}]  }
   0x1   :  { %v8_v0 = vld [vmem:[%s116_s0] sm:$0xff]  ;;  %v9_v1 = vld [vmem:[%s116_s0 + $0x8] sm:$0xff] }
   0x2   :  { %v10_v2 = vmax.f32 %v8_v0, 0.0  ;;  %v11_v3 = vmax.f32 %v9_v1, 0.0 }
   0x4   :  { %v102_v4 = vmul.f32 %v10_v2, %v10_v2  ;;  %v104_v5 = vmul.f32 %v11_v3, %v11_v3 }
   0x6   :  { %v14_v6 = vadd.f32 1.0, %v102_v4  ;;  %v15_v7 = vadd.f32 1.0, %v104_v5 }
   0x8   :  { %78 = vrsqrt.f32 %v14_v6  ;;  %vm23_vm0 = vcmp.eq.f32.partialorder %v14_v6, inf  ;;  %v26_v19 = vand.u32 2147483648, %v14_v6  ;;  %vm25_vm1 = vcmp.eq.f32.partialorder %v14_v6, 0.0 }
   0x9   :  { %80 = vrsqrt.f32 %v15_v7  ;;  %vm35_vm2 = vcmp.eq.f32.partialorder %v15_v7, inf  ;;  %v38_v22 = vand.u32 2147483648, %v15_v7  ;;  %vm37_vm3 = vcmp.eq.f32.partialorder %v15_v7, 0.0 }
   0xe   :  { %v79_v8 = vpop.eup %78 }
   0xf   :  { %v81_v9 = vpop.eup %80  ;;  %v17_v10 = vmul.f32 %v79_v8, %v14_v6 }
  0x10   :  { %v29_v11 = vmul.f32 %v81_v9, %v15_v7 }
  0x11   :  { %v18_v12 = vmul.f32 %v79_v8, %v17_v10 }
  0x12   :  { %v30_v13 = vmul.f32 %v81_v9, %v29_v11 }
  0x13   :  { %v19_v14 = vmul.f32 0.5, %v18_v12 }
  0x14   :  { %v31_v15 = vmul.f32 0.5, %v30_v13 }
  0x15   :  { %v20_v16 = vsub.f32 1.5, %v19_v14 }
  0x16   :  { %v32_v17 = vsub.f32 1.5, %v31_v15 }
  0x17   :  { %v21_v18 = vmul.f32 %v79_v8, %v20_v16 }
  0x18   :  { %v33_v20 = vmul.f32 %v81_v9, %v32_v17 }
  0x19   :  { %v22_v21 = vmul.f32 %v21_v18, %v14_v6 }
  0x1a   :  { %v34_v23 = vmul.f32 %v33_v20, %v15_v7 }
  0x1b   :  { %v24_v24 = vsel %vm23_vm0, %v14_v6, %v22_v21 }
  0x1c   :  { %v27_v25 = vsel %vm25_vm1, %v26_v19, %v24_v24  ;;  %v36_v26 = vsel %vm35_vm2, %v15_v7, %v34_v23 }
  0x1d   :  { %v40_v27 = vadd.f32 1.0, %v27_v25  ;;  %v39_v28 = vsel %vm37_vm3, %v38_v22, %v36_v26 }
  0x1e   :  { %v41_v29 = vadd.f32 1.0, %v39_v28 }
  0x1f   :  { %82 = vrcp.f32 %v40_v27  ;;  %vm47_vm4 = vweird.f32 %v40_v27  ;;  %v53_v33 = vand.u32 2147483648, %v40_v27  ;;  %v51_v36 = vand.u32 2147483647, %v40_v27 }
  0x20   :  { %84 = vrcp.f32 %v41_v29  ;;  %v68_v37 = vand.u32 2147483648, %v41_v29  ;;  %vm62_vm6 = vweird.f32 %v41_v29  ;;  %v66_v39 = vand.u32 2147483647, %v41_v29 }
  0x21   :  { %v54_v41 = vor.u32 1.1754944e-38, %v53_v33  ;;  %vm52_vm9 = vcmp.eq.f32.partialorder %v51_v36, 8.507059e+37 }
  0x22   :  { %v69_v44 = vor.u32 1.1754944e-38, %v68_v37  ;;  %vm67_vm11 = vcmp.eq.f32.partialorder %v66_v39, 8.507059e+37 }
  0x25   :  { %v83_v30 = vpop.eup %82 }
  0x26   :  { %v85_v31 = vpop.eup %84  ;;  %v43_v32 = vmul.f32 %v83_v30, %v40_v27  ;;  %vm48_vm5 = vweird.f32 %v83_v30 }
  0x27   :  { %v58_v34 = vmul.f32 %v85_v31, %v41_v29  ;;  %vm63_vm7 = vweird.f32 %v85_v31  ;;  %vm49_vm8 = vmor %vm47_vm4, %vm48_vm5 }
  0x28   :  { %v44_v35 = vsub.f32 1.0, %v43_v32  ;;  %vm64_vm10 = vmor %vm62_vm6, %vm63_vm7 }
  0x29   :  { %v59_v38 = vsub.f32 1.0, %v58_v34 }
  0x2a   :  { %v45_v40 = vmul.f32 %v83_v30, %v44_v35 }
  0x2b   :  { %v60_v42 = vmul.f32 %v85_v31, %v59_v38 }
  0x2c   :  { %v46_v43 = vadd.f32 %v83_v30, %v45_v40 }
  0x2d   :  { %v61_v45 = vadd.f32 %v85_v31, %v60_v42 }
  0x2e   :  { %v50_v46 = vsel %vm49_vm8, %v83_v30, %v46_v43 }
  0x2f   :  { %v55_v47 = vsel %vm52_vm9, %v54_v41, %v50_v46  ;;  %v65_v48 = vsel %vm64_vm10, %v85_v31, %v61_v45 }
  0x30   :  { %v56_v49 = vmul.f32 %v55_v47, %v102_v4  ;;  %v70_v50 = vsel %vm67_vm11, %v69_v44, %v65_v48 }
  0x31   :  { %v71_v51 = vmul.f32 %v70_v50, %v104_v5 }
  0x32   :  { %72 = vst [vmem:[%s117_s1] sm:$0xff] %v56_v49 }
  0x33   :  { %73 = vst [vmem:[%s117_s1 + $0x8] sm:$0xff] %v71_v51 }

</bundles_post_ra>
